<compile_context>
chip_gen: v7x
topology: tpu7x:2x2x1
jax: 0.10.0
libtpu: 0.0.40
codegen_flags: <defaults>
</compile_context>

<pallas_src>
import functools
import numpy as np
import jax
import jax.numpy as jnp
from jax.experimental import pallas as pl
from jax.experimental.pallas import tpu as pltpu


def _spectral_weight_kernel(xunf_ref, w1_ref, w2_ref, wc_ref, dftf_ref,
                            dftip_ref, dftiq_ref, cn_ref, sn_ref,
                            out_ref, y_scr, *, B, Cin, Cout, KK, L, center):
    """One grid step = B images. Rows = folded (batch, channel), lanes = L / 2L."""
    f32 = jnp.float32

    # ---- pre-DFT stage: involution kernel-gen + aggregation + f_inv_11, done as
    # per-image dots on the raw weights (no O(B^2) block-diagonal weights).  Each
    # image's y slab is written straight into the VMEM scratch, so accumulator
    # live ranges stay bounded and no concatenate / sublane relayout is needed
    # before the batched DFT matmul.
    for b in range(B):
        r_in = b * Cin
        x_b = xunf_ref[0, center, r_in:r_in + Cin, :]                    # (Cin, L)
        t_b = jnp.maximum(jnp.dot(w1_ref[...], x_b,
                                  preferred_element_type=f32), 0.0)      # (Cred_p, L)
        kw_b = jnp.dot(w2_ref[...], t_b, preferred_element_type=f32)     # (KK, L)

        inv_b = None
        for k in range(KK):
            tap = xunf_ref[0, k, r_in:r_in + Cin, :]                     # (Cin, L)
            term = kw_b[k:k + 1, :] * tap                                # row-k bcast
            inv_b = term if inv_b is None else inv_b + term

        y_b = jnp.dot(wc_ref[...], inv_b, preferred_element_type=f32)    # (Cout, L)
        y_scr[b * Cout:(b + 1) * Cout, :] = y_b

    # ---- spectral stage, batched over all M = B*Cout rows (fills MXU rows)
    y = y_scr[...]                                                       # (M, L)
    # forward DFT: spec = [Re(f) | -Im(f)]  (one fused matmul, 2L dense lanes)
    spec = jnp.dot(y, dftf_ref[...], preferred_element_type=f32)         # (M, 2L)

    # phase-noise rotation; cos/sin precomputed in the wrapper (no EUP chains):
    #   cn = [cos phi | sin phi], sn = [sin phi | -cos phi]
    p = spec * cn_ref[0]                      # lane-halves sum -> Re(f')
    q = spec * sn_ref[0]                      # lane-halves sum -> Im(f')

    # inverse DFT: half-swap and sign baked into dftiq -> z = [Re(ifft) | Im(ifft)]
    z = (jnp.dot(p, dftip_ref[...], preferred_element_type=f32) +
         jnp.dot(q, dftiq_ref[...], preferred_element_type=f32))         # (M, 2L)

    v = z * z
    v = v + pltpu.roll(v, L, axis=1)          # both halves = Re^2 + Im^2
    out_ref[0] = jnp.sqrt(v[:, :L])           # store only the L magnitude lanes


def _default_batch_per_step():
    # ~4 images/step fills a 128-row MXU (v5e); ~8 fills 256 rows (v6e/v7x).
    # Perf-only heuristic; a misclassified device just picks a slightly
    # sub-optimal fold, never a wrong result.
    try:
        kind = jax.devices()[0].device_kind.lower()
    except Exception:
        return 8
    if "v5 lite" in kind or "v5e" in kind or "v5lite" in kind:
        return 4
    return 8


def _largest_divisor_leq(n, cap):
    for d in range(min(n, cap), 0, -1):
        if n % d == 0:
            return d
    return 1


def spectral_weight_forward(x_nchw, params, noise_ncl, *, kernel_size,
                            batch_per_step=None):
    N, Cin, H, W = x_nchw.shape
    K = kernel_size
    KK = K * K
    L = H * W
    pad = (K - 1) // 2
    w1, w2, wconv = params['w1'], params['w2'], params['wconv']
    Cred = w1.shape[1]
    Cout = wconv.shape[1]

    if batch_per_step is None:
        batch_per_step = _default_batch_per_step()
    B = _largest_divisor_leq(N, batch_per_step)
    NB = N // B

    # glue: channel-major zero-padded KxK neighbour taps (im2col), B images folded
    # per grid step.  TODO(synk): for larger H*W generate taps in-kernel (halo +
    # lane rotation) to drop the KK-fold HBM read amplification; negligible at L=64.
    xp = jnp.pad(x_nchw, ((0, 0), (0, 0), (pad, pad), (pad, pad)))
    taps = [xp[:, :, ky:ky + H, kx:kx + W].reshape(N, Cin, L)
            for ky in range(K) for kx in range(K)]
    x_unf = jnp.stack(taps, axis=1)                                    # (N, KK, Cin, L)
    x_unf = jnp.transpose(x_unf.reshape(NB, B, KK, Cin, L), (0, 2, 1, 3, 4))
    x_unf = x_unf.reshape(NB, KK, B * Cin, L)

    # glue: raw transposed 1x1-conv weights (no kron); pad the reduced dim to a
    # sublane multiple so both involution matmuls stay 8-aligned (zeros are inert).
    Cred_p = ((Cred + 7) // 8) * 8
    w1t = jnp.pad(w1.T.astype(jnp.float32), ((0, Cred_p - Cred), (0, 0)))  # (Cred_p, Cin)
    w2t = jnp.pad(w2.T.astype(jnp.float32), ((0, 0), (0, Cred_p - Cred)))  # (KK, Cred_p)
    wct = wconv.T.astype(jnp.float32)                                      # (Cout, Cin)

    # glue: fused real-DFT constants (phase reduced mod L for f32 accuracy).
    #   forward:  spec = y @ [cos | sin]                 (L, 2L) -> [Re | -Im]
    #   inverse:  z = p @ P + q @ Q, P = [[C|S],[C|S]]/L, Q = [[-S|C],[-S|C]]/L
    idx = np.arange(L)
    ang = (np.outer(idx, idx) % L).astype(np.float64) * (2.0 * np.pi / L)
    C = np.cos(ang)
    S = np.sin(ang)
    dft_fwd = jnp.asarray(np.concatenate([C, S], axis=1), jnp.float32)          # (L, 2L)
    dft_inv_p = jnp.asarray(np.tile(np.concatenate([C, S], axis=1) / L, (2, 1)),
                            jnp.float32)                                        # (2L, 2L)
    dft_inv_q = jnp.asarray(np.tile(np.concatenate([-S, C], axis=1) / L, (2, 1)),
                            jnp.float32)                                        # (2L, 2L)

    # glue: phase-noise rotation coefficients precomputed (fuses into one XLA op);
    # the kernel never evaluates a transcendental.
    cphi = jnp.cos(noise_ncl)
    sphi = jnp.sin(noise_ncl)
    cn = jnp.concatenate([cphi, sphi], axis=-1).reshape(NB, B * Cout, 2 * L)
    sn = jnp.concatenate([sphi, -cphi], axis=-1).reshape(NB, B * Cout, 2 * L)

    center = (K // 2) * K + (K // 2)
    kernel = functools.partial(_spectral_weight_kernel, B=B, Cin=Cin, Cout=Cout,
                               KK=KK, L=L, center=center)

    out = pl.pallas_call(
        kernel,
        out_shape=jax.ShapeDtypeStruct((NB, B * Cout, L), jnp.float32),
        grid_spec=pltpu.PrefetchScalarGridSpec(
            num_scalar_prefetch=0,
            grid=(NB,),
            in_specs=[
                pl.BlockSpec((1, KK, B * Cin, L), lambda n: (n, 0, 0, 0)),  # taps
                pl.BlockSpec((Cred_p, Cin), lambda n: (0, 0)),              # involution conv1^T
                pl.BlockSpec((KK, Cred_p), lambda n: (0, 0)),               # involution conv2^T
                pl.BlockSpec((Cout, Cin), lambda n: (0, 0)),                # f_inv_11^T
                pl.BlockSpec((L, 2 * L), lambda n: (0, 0)),                 # fwd DFT [cos|sin]
                pl.BlockSpec((2 * L, 2 * L), lambda n: (0, 0)),             # inv DFT P
                pl.BlockSpec((2 * L, 2 * L), lambda n: (0, 0)),             # inv DFT Q (sign+swap baked)
                pl.BlockSpec((1, B * Cout, 2 * L), lambda n: (n, 0, 0)),    # [cos phi | sin phi]
                pl.BlockSpec((1, B * Cout, 2 * L), lambda n: (n, 0, 0)),    # [sin phi | -cos phi]
            ],
            out_specs=pl.BlockSpec((1, B * Cout, L), lambda n: (n, 0, 0)),
            scratch_shapes=[pltpu.VMEM((B * Cout, L), jnp.float32)],
        ),
        compiler_params=pltpu.CompilerParams(dimension_semantics=("parallel",)),
    )(x_unf, w1t, w2t, wct, dft_fwd, dft_inv_p, dft_inv_q, cn, sn)

    # (NB, B*Cout, L) -> (N, Cout, H, W) is a contiguous, free reshape view.
    return out.reshape(N, Cout, H, W)


def reference_forward(x_nchw, params, noise_ncl, K):
    """Pure-JAX reference (uses jnp.fft) for validation."""
    N, Cin, H, W = x_nchw.shape
    pad = (K - 1) // 2
    w1, w2, wconv = params['w1'], params['w2'], params['wconv']
    t = jax.nn.relu(jnp.einsum('nchw,cd->ndhw', x_nchw, w1))
    kw = jnp.einsum('ndhw,dk->nkhw', t, w2)                            # (N, KK, H, W)
    xp = jnp.pad(x_nchw, ((0, 0), (0, 0), (pad, pad), (pad, pad)))
    patches = jnp.stack([xp[:, :, ky:ky + H, kx:kx + W]
                         for ky in range(K) for kx in range(K)], axis=2)  # (N,C,KK,H,W)
    inv = jnp.sum(kw[:, None] * patches, axis=2)                       # (N, Cin, H, W)
    y = jnp.einsum('nchw,co->nohw', inv, wconv)                        # (N, Cout, H, W)
    Cout = y.shape[1]
    yf = y.reshape(N, Cout, H * W)
    f = jnp.fft.fft(yf, axis=2)
    f2 = jnp.abs(f) * jnp.exp(1j * (jnp.angle(f) + noise_ncl))
    out = jnp.abs(jnp.fft.ifft(f2, axis=2))
    return out.reshape(N, Cout, H, W)


if __name__ == "__main__":
    key = jax.random.PRNGKey(0)
    N, Cin, H, W = 2, 16, 8, 8
    Cout = 16
    K = 3                     # Spectral_Weight kernel_size (involution window)
    reduction = 4
    Cred = Cin // reduction
    KK = K * K
    L = H * W

    k_x, k_w1, k_w2, k_wc, k_noise = jax.random.split(key, 5)
    x = jax.random.normal(k_x, (N, Cin, H, W), dtype=jnp.float32)
    params = {
        'w1': jax.random.normal(k_w1, (Cin, Cred), dtype=jnp.float32) * 0.2,     # involution conv1 (1x1)
        'w2': jax.random.normal(k_w2, (Cred, KK), dtype=jnp.float32) * 0.2,      # involution conv2 (1x1)
        'wconv': jax.random.normal(k_wc, (Cin, Cout), dtype=jnp.float32) * 0.2,  # f_inv_11 (1x1, bias=False)
    }

    # learnable scalars from __init__ (alpha is dead code in the reference forward)
    noise_scale = jnp.float32(0.01)
    privacy_budget = jnp.float32(1.0)
    sensitivity = 1.0
    lap_scale = sensitivity / jnp.maximum(jnp.abs(privacy_budget), 1e-10)
    noise = (jax.random.laplace(k_noise, (N, Cout, L), dtype=jnp.float32)
             * lap_scale * noise_scale)                                # channel-major (N, C, L)

    fwd = jax.jit(functools.partial(spectral_weight_forward, kernel_size=K))
    out = jax.block_until_ready(fwd(x, params, noise))

    ref = reference_forward(x, params, noise, K)
    np.testing.assert_allclose(np.asarray(out), np.asarray(ref), rtol=2e-3, atol=2e-3)
    print("KERNEL_OK")
</pallas_src>

<mosaic_0001>
module attributes {stable_mosaic.version = 11 : i64} {
  func.func @_spectral_weight_kernel(%arg0: i32, %arg1: memref<1x9x32x64xf32, #tpu.memory_space<vmem>>, %arg2: memref<8x16xf32, #tpu.memory_space<vmem>>, %arg3: memref<9x8xf32, #tpu.memory_space<vmem>>, %arg4: memref<16x16xf32, #tpu.memory_space<vmem>>, %arg5: memref<64x128xf32, #tpu.memory_space<vmem>>, %arg6: memref<128x128xf32, #tpu.memory_space<vmem>>, %arg7: memref<128x128xf32, #tpu.memory_space<vmem>>, %arg8: memref<1x32x128xf32, #tpu.memory_space<vmem>>, %arg9: memref<1x32x128xf32, #tpu.memory_space<vmem>>, %arg10: memref<1x32x64xf32, #tpu.memory_space<vmem>>, %arg11: memref<32x64xf32, #tpu.memory_space<vmem>>) attributes {dimension_semantics = [#tpu.dimension_semantics<parallel>], iteration_bounds = array<i64: 1>, scalar_prefetch = 0 : i64, scratch_operands = 1 : i64, tpu.core_type = #tpu.core_type<tc>, window_params = [{transform_indices = @transform_0, window_bounds = array<i64: 1, 9, 32, 64>}, {pipeline_mode = #tpu.pipeline_mode<synchronous>, transform_indices = @transform_1, window_bounds = array<i64: 8, 16>}, {pipeline_mode = #tpu.pipeline_mode<synchronous>, transform_indices = @transform_2, window_bounds = array<i64: 9, 8>}, {pipeline_mode = #tpu.pipeline_mode<synchronous>, transform_indices = @transform_3, window_bounds = array<i64: 16, 16>}, {pipeline_mode = #tpu.pipeline_mode<synchronous>, transform_indices = @transform_4, window_bounds = array<i64: 64, 128>}, {pipeline_mode = #tpu.pipeline_mode<synchronous>, transform_indices = @transform_5, window_bounds = array<i64: 128, 128>}, {pipeline_mode = #tpu.pipeline_mode<synchronous>, transform_indices = @transform_6, window_bounds = array<i64: 128, 128>}, {transform_indices = @transform_7, window_bounds = array<i64: 1, 32, 128>}, {transform_indices = @transform_8, window_bounds = array<i64: 1, 32, 128>}, {transform_indices = @transform_9, window_bounds = array<i64: 1, 32, 64>}]} {
    %c0 = arith.constant 0 : index
    %c4 = arith.constant 4 : index
    %c0_0 = arith.constant 0 : index
    %c0_1 = arith.constant 0 : index
    %0 = vector.load %arg1[%c0, %c4, %c0_0, %c0_1] : memref<1x9x32x64xf32, #tpu.memory_space<vmem>>, vector<1x1x16x64xf32>
    %1 = vector.shape_cast %0 : vector<1x1x16x64xf32> to vector<16x64xf32>
    %c0_2 = arith.constant 0 : index
    %c0_3 = arith.constant 0 : index
    %2 = vector.load %arg2[%c0_2, %c0_3] : memref<8x16xf32, #tpu.memory_space<vmem>>, vector<8x16xf32>
    %cst = arith.constant dense<0.000000e+00> : vector<8x64xf32>
    %3 = tpu.matmul %2, %1, %cst {dimension_numbers = #tpu.dot_dimension_numbers<[1], [0], [0], [1], [0, 0, 1, 1], [], []>} : vector<8x16xf32>, vector<16x64xf32>, vector<8x64xf32> -> vector<8x64xf32>
    %cst_4 = arith.constant 0.000000e+00 : f32
    %4 = vector.broadcast %cst_4 : f32 to vector<8x64xf32>
    %5 = arith.maximumf %3, %4 : vector<8x64xf32>
    %c0_5 = arith.constant 0 : index
    %c0_6 = arith.constant 0 : index
    %6 = vector.load %arg3[%c0_5, %c0_6] : memref<9x8xf32, #tpu.memory_space<vmem>>, vector<9x8xf32>
    %cst_7 = arith.constant dense<0.000000e+00> : vector<9x64xf32>
    %7 = tpu.matmul %6, %5, %cst_7 {dimension_numbers = #tpu.dot_dimension_numbers<[1], [0], [0], [1], [0, 0, 1, 1], [], []>} : vector<9x8xf32>, vector<8x64xf32>, vector<9x64xf32> -> vector<9x64xf32>
    %c0_8 = arith.constant 0 : index
    %c0_9 = arith.constant 0 : index
    %c0_10 = arith.constant 0 : index
    %c0_11 = arith.constant 0 : index
    %8 = vector.load %arg1[%c0_8, %c0_9, %c0_10, %c0_11] : memref<1x9x32x64xf32, #tpu.memory_space<vmem>>, vector<1x1x16x64xf32>
    %9 = vector.shape_cast %8 : vector<1x1x16x64xf32> to vector<16x64xf32>
    %10 = vector.extract_strided_slice %7 {offsets = [0, 0], sizes = [1, 64], strides = [1, 1]} : vector<9x64xf32> to vector<1x64xf32>
    %11 = vector.broadcast %10 : vector<1x64xf32> to vector<16x64xf32>
    %12 = arith.mulf %11, %9 : vector<16x64xf32>
    %c0_12 = arith.constant 0 : index
    %c1 = arith.constant 1 : index
    %c0_13 = arith.constant 0 : index
    %c0_14 = arith.constant 0 : index
    %13 = vector.load %arg1[%c0_12, %c1, %c0_13, %c0_14] : memref<1x9x32x64xf32, #tpu.memory_space<vmem>>, vector<1x1x16x64xf32>
    %14 = vector.shape_cast %13 : vector<1x1x16x64xf32> to vector<16x64xf32>
    %15 = vector.extract_strided_slice %7 {offsets = [1, 0], sizes = [1, 64], strides = [1, 1]} : vector<9x64xf32> to vector<1x64xf32>
    %16 = vector.broadcast %15 : vector<1x64xf32> to vector<16x64xf32>
    %17 = arith.mulf %16, %14 : vector<16x64xf32>
    %18 = arith.addf %12, %17 : vector<16x64xf32>
    %c0_15 = arith.constant 0 : index
    %c2 = arith.constant 2 : index
    %c0_16 = arith.constant 0 : index
    %c0_17 = arith.constant 0 : index
    %19 = vector.load %arg1[%c0_15, %c2, %c0_16, %c0_17] : memref<1x9x32x64xf32, #tpu.memory_space<vmem>>, vector<1x1x16x64xf32>
    %20 = vector.shape_cast %19 : vector<1x1x16x64xf32> to vector<16x64xf32>
    %21 = vector.extract_strided_slice %7 {offsets = [2, 0], sizes = [1, 64], strides = [1, 1]} : vector<9x64xf32> to vector<1x64xf32>
    %22 = vector.broadcast %21 : vector<1x64xf32> to vector<16x64xf32>
    %23 = arith.mulf %22, %20 : vector<16x64xf32>
    %24 = arith.addf %18, %23 : vector<16x64xf32>
    %c0_18 = arith.constant 0 : index
    %c3 = arith.constant 3 : index
    %c0_19 = arith.constant 0 : index
    %c0_20 = arith.constant 0 : index
    %25 = vector.load %arg1[%c0_18, %c3, %c0_19, %c0_20] : memref<1x9x32x64xf32, #tpu.memory_space<vmem>>, vector<1x1x16x64xf32>
    %26 = vector.shape_cast %25 : vector<1x1x16x64xf32> to vector<16x64xf32>
    %27 = vector.extract_strided_slice %7 {offsets = [3, 0], sizes = [1, 64], strides = [1, 1]} : vector<9x64xf32> to vector<1x64xf32>
    %28 = vector.broadcast %27 : vector<1x64xf32> to vector<16x64xf32>
    %29 = arith.mulf %28, %26 : vector<16x64xf32>
    %30 = arith.addf %24, %29 : vector<16x64xf32>
    %c0_21 = arith.constant 0 : index
    %c4_22 = arith.constant 4 : index
    %c0_23 = arith.constant 0 : index
    %c0_24 = arith.constant 0 : index
    %31 = vector.load %arg1[%c0_21, %c4_22, %c0_23, %c0_24] : memref<1x9x32x64xf32, #tpu.memory_space<vmem>>, vector<1x1x16x64xf32>
    %32 = vector.shape_cast %31 : vector<1x1x16x64xf32> to vector<16x64xf32>
    %33 = vector.extract_strided_slice %7 {offsets = [4, 0], sizes = [1, 64], strides = [1, 1]} : vector<9x64xf32> to vector<1x64xf32>
    %34 = vector.broadcast %33 : vector<1x64xf32> to vector<16x64xf32>
    %35 = arith.mulf %34, %32 : vector<16x64xf32>
    %36 = arith.addf %30, %35 : vector<16x64xf32>
    %c0_25 = arith.constant 0 : index
    %c5 = arith.constant 5 : index
    %c0_26 = arith.constant 0 : index
    %c0_27 = arith.constant 0 : index
    %37 = vector.load %arg1[%c0_25, %c5, %c0_26, %c0_27] : memref<1x9x32x64xf32, #tpu.memory_space<vmem>>, vector<1x1x16x64xf32>
    %38 = vector.shape_cast %37 : vector<1x1x16x64xf32> to vector<16x64xf32>
    %39 = vector.extract_strided_slice %7 {offsets = [5, 0], sizes = [1, 64], strides = [1, 1]} : vector<9x64xf32> to vector<1x64xf32>
    %40 = vector.broadcast %39 : vector<1x64xf32> to vector<16x64xf32>
    %41 = arith.mulf %40, %38 : vector<16x64xf32>
    %42 = arith.addf %36, %41 : vector<16x64xf32>
    %c0_28 = arith.constant 0 : index
    %c6 = arith.constant 6 : index
    %c0_29 = arith.constant 0 : index
    %c0_30 = arith.constant 0 : index
    %43 = vector.load %arg1[%c0_28, %c6, %c0_29, %c0_30] : memref<1x9x32x64xf32, #tpu.memory_space<vmem>>, vector<1x1x16x64xf32>
    %44 = vector.shape_cast %43 : vector<1x1x16x64xf32> to vector<16x64xf32>
    %45 = vector.extract_strided_slice %7 {offsets = [6, 0], sizes = [1, 64], strides = [1, 1]} : vector<9x64xf32> to vector<1x64xf32>
    %46 = vector.broadcast %45 : vector<1x64xf32> to vector<16x64xf32>
    %47 = arith.mulf %46, %44 : vector<16x64xf32>
    %48 = arith.addf %42, %47 : vector<16x64xf32>
    %c0_31 = arith.constant 0 : index
    %c7 = arith.constant 7 : index
    %c0_32 = arith.constant 0 : index
    %c0_33 = arith.constant 0 : index
    %49 = vector.load %arg1[%c0_31, %c7, %c0_32, %c0_33] : memref<1x9x32x64xf32, #tpu.memory_space<vmem>>, vector<1x1x16x64xf32>
    %50 = vector.shape_cast %49 : vector<1x1x16x64xf32> to vector<16x64xf32>
    %51 = vector.extract_strided_slice %7 {offsets = [7, 0], sizes = [1, 64], strides = [1, 1]} : vector<9x64xf32> to vector<1x64xf32>
    %52 = vector.broadcast %51 : vector<1x64xf32> to vector<16x64xf32>
    %53 = arith.mulf %52, %50 : vector<16x64xf32>
    %54 = arith.addf %48, %53 : vector<16x64xf32>
    %c0_34 = arith.constant 0 : index
    %c8 = arith.constant 8 : index
    %c0_35 = arith.constant 0 : index
    %c0_36 = arith.constant 0 : index
    %55 = vector.load %arg1[%c0_34, %c8, %c0_35, %c0_36] : memref<1x9x32x64xf32, #tpu.memory_space<vmem>>, vector<1x1x16x64xf32>
    %56 = vector.shape_cast %55 : vector<1x1x16x64xf32> to vector<16x64xf32>
    %57 = vector.extract_strided_slice %7 {offsets = [8, 0], sizes = [1, 64], strides = [1, 1]} : vector<9x64xf32> to vector<1x64xf32>
    %58 = vector.broadcast %57 : vector<1x64xf32> to vector<16x64xf32>
    %59 = arith.mulf %58, %56 : vector<16x64xf32>
    %60 = arith.addf %54, %59 : vector<16x64xf32>
    %c0_37 = arith.constant 0 : index
    %c0_38 = arith.constant 0 : index
    %61 = vector.load %arg4[%c0_37, %c0_38] : memref<16x16xf32, #tpu.memory_space<vmem>>, vector<16x16xf32>
    %cst_39 = arith.constant dense<0.000000e+00> : vector<16x64xf32>
    %62 = tpu.matmul %61, %60, %cst_39 {dimension_numbers = #tpu.dot_dimension_numbers<[1], [0], [0], [1], [0, 0, 1, 1], [], []>} : vector<16x16xf32>, vector<16x64xf32>, vector<16x64xf32> -> vector<16x64xf32>
    %c0_40 = arith.constant 0 : index
    %c0_41 = arith.constant 0 : index
    %63 = vector.load %arg11[%c0_40, %c0_41] : memref<32x64xf32, #tpu.memory_space<vmem>>, vector<16x64xf32>
    tpu.vector_store %arg11[%c0_40, %c0_41], %62 {strides = array<i32>} : memref<32x64xf32, #tpu.memory_space<vmem>>, vector<16x64xf32>,
    %c0_42 = arith.constant 0 : index
    %c4_43 = arith.constant 4 : index
    %c16 = arith.constant 16 : index
    %c0_44 = arith.constant 0 : index
    %64 = vector.load %arg1[%c0_42, %c4_43, %c16, %c0_44] : memref<1x9x32x64xf32, #tpu.memory_space<vmem>>, vector<1x1x16x64xf32>
    %65 = vector.shape_cast %64 : vector<1x1x16x64xf32> to vector<16x64xf32>
    %c0_45 = arith.constant 0 : index
    %c0_46 = arith.constant 0 : index
    %66 = vector.load %arg2[%c0_45, %c0_46] : memref<8x16xf32, #tpu.memory_space<vmem>>, vector<8x16xf32>
    %cst_47 = arith.constant dense<0.000000e+00> : vector<8x64xf32>
    %67 = tpu.matmul %66, %65, %cst_47 {dimension_numbers = #tpu.dot_dimension_numbers<[1], [0], [0], [1], [0, 0, 1, 1], [], []>} : vector<8x16xf32>, vector<16x64xf32>, vector<8x64xf32> -> vector<8x64xf32>
    %cst_48 = arith.constant 0.000000e+00 : f32
    %68 = vector.broadcast %cst_48 : f32 to vector<8x64xf32>
    %69 = arith.maximumf %67, %68 : vector<8x64xf32>
    %c0_49 = arith.constant 0 : index
    %c0_50 = arith.constant 0 : index
    %70 = vector.load %arg3[%c0_49, %c0_50] : memref<9x8xf32, #tpu.memory_space<vmem>>, vector<9x8xf32>
    %cst_51 = arith.constant dense<0.000000e+00> : vector<9x64xf32>
    %71 = tpu.matmul %70, %69, %cst_51 {dimension_numbers = #tpu.dot_dimension_numbers<[1], [0], [0], [1], [0, 0, 1, 1], [], []>} : vector<9x8xf32>, vector<8x64xf32>, vector<9x64xf32> -> vector<9x64xf32>
    %c0_52 = arith.constant 0 : index
    %c0_53 = arith.constant 0 : index
    %c16_54 = arith.constant 16 : index
    %c0_55 = arith.constant 0 : index
    %72 = vector.load %arg1[%c0_52, %c0_53, %c16_54, %c0_55] : memref<1x9x32x64xf32, #tpu.memory_space<vmem>>, vector<1x1x16x64xf32>
    %73 = vector.shape_cast %72 : vector<1x1x16x64xf32> to vector<16x64xf32>
    %74 = vector.extract_strided_slice %71 {offsets = [0, 0], sizes = [1, 64], strides = [1, 1]} : vector<9x64xf32> to vector<1x64xf32>
    %75 = vector.broadcast %74 : vector<1x64xf32> to vector<16x64xf32>
    %76 = arith.mulf %75, %73 : vector<16x64xf32>
    %c0_56 = arith.constant 0 : index
    %c1_57 = arith.constant 1 : index
    %c16_58 = arith.constant 16 : index
    %c0_59 = arith.constant 0 : index
    %77 = vector.load %arg1[%c0_56, %c1_57, %c16_58, %c0_59] : memref<1x9x32x64xf32, #tpu.memory_space<vmem>>, vector<1x1x16x64xf32>
    %78 = vector.shape_cast %77 : vector<1x1x16x64xf32> to vector<16x64xf32>
    %79 = vector.extract_strided_slice %71 {offsets = [1, 0], sizes = [1, 64], strides = [1, 1]} : vector<9x64xf32> to vector<1x64xf32>
    %80 = vector.broadcast %79 : vector<1x64xf32> to vector<16x64xf32>
    %81 = arith.mulf %80, %78 : vector<16x64xf32>
    %82 = arith.addf %76, %81 : vector<16x64xf32>
    %c0_60 = arith.constant 0 : index
    %c2_61 = arith.constant 2 : index
    %c16_62 = arith.constant 16 : index
    %c0_63 = arith.constant 0 : index
    %83 = vector.load %arg1[%c0_60, %c2_61, %c16_62, %c0_63] : memref<1x9x32x64xf32, #tpu.memory_space<vmem>>, vector<1x1x16x64xf32>
    %84 = vector.shape_cast %83 : vector<1x1x16x64xf32> to vector<16x64xf32>
    %85 = vector.extract_strided_slice %71 {offsets = [2, 0], sizes = [1, 64], strides = [1, 1]} : vector<9x64xf32> to vector<1x64xf32>
    %86 = vector.broadcast %85 : vector<1x64xf32> to vector<16x64xf32>
    %87 = arith.mulf %86, %84 : vector<16x64xf32>
    %88 = arith.addf %82, %87 : vector<16x64xf32>
    %c0_64 = arith.constant 0 : index
    %c3_65 = arith.constant 3 : index
    %c16_66 = arith.constant 16 : index
    %c0_67 = arith.constant 0 : index
    %89 = vector.load %arg1[%c0_64, %c3_65, %c16_66, %c0_67] : memref<1x9x32x64xf32, #tpu.memory_space<vmem>>, vector<1x1x16x64xf32>
    %90 = vector.shape_cast %89 : vector<1x1x16x64xf32> to vector<16x64xf32>
    %91 = vector.extract_strided_slice %71 {offsets = [3, 0], sizes = [1, 64], strides = [1, 1]} : vector<9x64xf32> to vector<1x64xf32>
    %92 = vector.broadcast %91 : vector<1x64xf32> to vector<16x64xf32>
    %93 = arith.mulf %92, %90 : vector<16x64xf32>
    %94 = arith.addf %88, %93 : vector<16x64xf32>
    %c0_68 = arith.constant 0 : index
    %c4_69 = arith.constant 4 : index
    %c16_70 = arith.constant 16 : index
    %c0_71 = arith.constant 0 : index
    %95 = vector.load %arg1[%c0_68, %c4_69, %c16_70, %c0_71] : memref<1x9x32x64xf32, #tpu.memory_space<vmem>>, vector<1x1x16x64xf32>
    %96 = vector.shape_cast %95 : vector<1x1x16x64xf32> to vector<16x64xf32>
    %97 = vector.extract_strided_slice %71 {offsets = [4, 0], sizes = [1, 64], strides = [1, 1]} : vector<9x64xf32> to vector<1x64xf32>
    %98 = vector.broadcast %97 : vector<1x64xf32> to vector<16x64xf32>
    %99 = arith.mulf %98, %96 : vector<16x64xf32>
    %100 = arith.addf %94, %99 : vector<16x64xf32>
    %c0_72 = arith.constant 0 : index
    %c5_73 = arith.constant 5 : index
    %c16_74 = arith.constant 16 : index
    %c0_75 = arith.constant 0 : index
    %101 = vector.load %arg1[%c0_72, %c5_73, %c16_74, %c0_75] : memref<1x9x32x64xf32, #tpu.memory_space<vmem>>, vector<1x1x16x64xf32>
    %102 = vector.shape_cast %101 : vector<1x1x16x64xf32> to vector<16x64xf32>
    %103 = vector.extract_strided_slice %71 {offsets = [5, 0], sizes = [1, 64], strides = [1, 1]} : vector<9x64xf32> to vector<1x64xf32>
    %104 = vector.broadcast %103 : vector<1x64xf32> to vector<16x64xf32>
    %105 = arith.mulf %104, %102 : vector<16x64xf32>
    %106 = arith.addf %100, %105 : vector<16x64xf32>
    %c0_76 = arith.constant 0 : index
    %c6_77 = arith.constant 6 : index
    %c16_78 = arith.constant 16 : index
    %c0_79 = arith.constant 0 : index
    %107 = vector.load %arg1[%c0_76, %c6_77, %c16_78, %c0_79] : memref<1x9x32x64xf32, #tpu.memory_space<vmem>>, vector<1x1x16x64xf32>
    %108 = vector.shape_cast %107 : vector<1x1x16x64xf32> to vector<16x64xf32>
    %109 = vector.extract_strided_slice %71 {offsets = [6, 0], sizes = [1, 64], strides = [1, 1]} : vector<9x64xf32> to vector<1x64xf32>
    %110 = vector.broadcast %109 : vector<1x64xf32> to vector<16x64xf32>
    %111 = arith.mulf %110, %108 : vector<16x64xf32>
    %112 = arith.addf %106, %111 : vector<16x64xf32>
    %c0_80 = arith.constant 0 : index
    %c7_81 = arith.constant 7 : index
    %c16_82 = arith.constant 16 : index
    %c0_83 = arith.constant 0 : index
    %113 = vector.load %arg1[%c0_80, %c7_81, %c16_82, %c0_83] : memref<1x9x32x64xf32, #tpu.memory_space<vmem>>, vector<1x1x16x64xf32>
    %114 = vector.shape_cast %113 : vector<1x1x16x64xf32> to vector<16x64xf32>
    %115 = vector.extract_strided_slice %71 {offsets = [7, 0], sizes = [1, 64], strides = [1, 1]} : vector<9x64xf32> to vector<1x64xf32>
    %116 = vector.broadcast %115 : vector<1x64xf32> to vector<16x64xf32>
    %117 = arith.mulf %116, %114 : vector<16x64xf32>
    %118 = arith.addf %112, %117 : vector<16x64xf32>
    %c0_84 = arith.constant 0 : index
    %c8_85 = arith.constant 8 : index
    %c16_86 = arith.constant 16 : index
    %c0_87 = arith.constant 0 : index
    %119 = vector.load %arg1[%c0_84, %c8_85, %c16_86, %c0_87] : memref<1x9x32x64xf32, #tpu.memory_space<vmem>>, vector<1x1x16x64xf32>
    %120 = vector.shape_cast %119 : vector<1x1x16x64xf32> to vector<16x64xf32>
    %121 = vector.extract_strided_slice %71 {offsets = [8, 0], sizes = [1, 64], strides = [1, 1]} : vector<9x64xf32> to vector<1x64xf32>
    %122 = vector.broadcast %121 : vector<1x64xf32> to vector<16x64xf32>
    %123 = arith.mulf %122, %120 : vector<16x64xf32>
    %124 = arith.addf %118, %123 : vector<16x64xf32>
    %c0_88 = arith.constant 0 : index
    %c0_89 = arith.constant 0 : index
    %125 = vector.load %arg4[%c0_88, %c0_89] : memref<16x16xf32, #tpu.memory_space<vmem>>, vector<16x16xf32>
    %cst_90 = arith.constant dense<0.000000e+00> : vector<16x64xf32>
    %126 = tpu.matmul %125, %124, %cst_90 {dimension_numbers = #tpu.dot_dimension_numbers<[1], [0], [0], [1], [0, 0, 1, 1], [], []>} : vector<16x16xf32>, vector<16x64xf32>, vector<16x64xf32> -> vector<16x64xf32>
    %c16_91 = arith.constant 16 : index
    %c0_92 = arith.constant 0 : index
    %127 = vector.load %arg11[%c16_91, %c0_92] : memref<32x64xf32, #tpu.memory_space<vmem>>, vector<16x64xf32>
    tpu.vector_store %arg11[%c16_91, %c0_92], %126 {strides = array<i32>} : memref<32x64xf32, #tpu.memory_space<vmem>>, vector<16x64xf32>,
    %c0_93 = arith.constant 0 : index
    %c0_94 = arith.constant 0 : index
    %128 = vector.load %arg11[%c0_93, %c0_94] : memref<32x64xf32, #tpu.memory_space<vmem>>, vector<32x64xf32>
    %c0_95 = arith.constant 0 : index
    %c0_96 = arith.constant 0 : index
    %129 = vector.load %arg5[%c0_95, %c0_96] : memref<64x128xf32, #tpu.memory_space<vmem>>, vector<64x128xf32>
    %cst_97 = arith.constant dense<0.000000e+00> : vector<32x128xf32>
    %130 = tpu.matmul %128, %129, %cst_97 {dimension_numbers = #tpu.dot_dimension_numbers<[1], [0], [0], [1], [0, 0, 1, 1], [], []>} : vector<32x64xf32>, vector<64x128xf32>, vector<32x128xf32> -> vector<32x128xf32>
    %c0_98 = arith.constant 0 : index
    %c0_99 = arith.constant 0 : index
    %c0_100 = arith.constant 0 : index
    %131 = vector.load %arg8[%c0_98, %c0_99, %c0_100] : memref<1x32x128xf32, #tpu.memory_space<vmem>>, vector<1x32x128xf32>
    %132 = vector.shape_cast %131 : vector<1x32x128xf32> to vector<32x128xf32>
    %133 = arith.mulf %130, %132 : vector<32x128xf32>
    %c0_101 = arith.constant 0 : index
    %c0_102 = arith.constant 0 : index
    %c0_103 = arith.constant 0 : index
    %134 = vector.load %arg9[%c0_101, %c0_102, %c0_103] : memref<1x32x128xf32, #tpu.memory_space<vmem>>, vector<1x32x128xf32>
    %135 = vector.shape_cast %134 : vector<1x32x128xf32> to vector<32x128xf32>
    %136 = arith.mulf %130, %135 : vector<32x128xf32>
    %c0_104 = arith.constant 0 : index
    %c0_105 = arith.constant 0 : index
    %137 = vector.load %arg6[%c0_104, %c0_105] : memref<128x128xf32, #tpu.memory_space<vmem>>, vector<128x128xf32>
    %cst_106 = arith.constant dense<0.000000e+00> : vector<32x128xf32>
    %138 = tpu.matmul %133, %137, %cst_106 {dimension_numbers = #tpu.dot_dimension_numbers<[1], [0], [0], [1], [0, 0, 1, 1], [], []>} : vector<32x128xf32>, vector<128x128xf32>, vector<32x128xf32> -> vector<32x128xf32>
    %c0_107 = arith.constant 0 : index
    %c0_108 = arith.constant 0 : index
    %139 = vector.load %arg7[%c0_107, %c0_108] : memref<128x128xf32, #tpu.memory_space<vmem>>, vector<128x128xf32>
    %cst_109 = arith.constant dense<0.000000e+00> : vector<32x128xf32>
    %140 = tpu.matmul %136, %139, %cst_109 {dimension_numbers = #tpu.dot_dimension_numbers<[1], [0], [0], [1], [0, 0, 1, 1], [], []>} : vector<32x128xf32>, vector<128x128xf32>, vector<32x128xf32> -> vector<32x128xf32>
    %141 = arith.addf %138, %140 : vector<32x128xf32>
    %142 = arith.mulf %141, %141 : vector<32x128xf32>
    %c64_i32 = arith.constant 64 : i32
    %143 = tpu.dynamic_rotate %142 by %c64_i32 dim 1 : vector<32x128xf32>, i32 -> vector<32x128xf32>
    %144 = arith.addf %142, %143 : vector<32x128xf32>
    %145 = vector.extract_strided_slice %144 {offsets = [0, 0], sizes = [32, 64], strides = [1, 1]} : vector<32x128xf32> to vector<32x64xf32>
    %146 = math.sqrt %145 : vector<32x64xf32>
    %c0_110 = arith.constant 0 : index
    %c0_111 = arith.constant 0 : index
    %c0_112 = arith.constant 0 : index
    %147 = vector.load %arg10[%c0_110, %c0_111, %c0_112] : memref<1x32x64xf32, #tpu.memory_space<vmem>>, vector<1x32x64xf32>
    %148 = vector.shape_cast %147 : vector<1x32x64xf32> to vector<32x64xf32>
    %149 = vector.shape_cast %146 : vector<32x64xf32> to vector<1x32x64xf32>
    tpu.vector_store %arg10[%c0_110, %c0_111, %c0_112], %149 {strides = array<i32>} : memref<1x32x64xf32, #tpu.memory_space<vmem>>, vector<1x32x64xf32>,
    return
  }
  func.func @transform_0(%arg0: i32) -> (i32, i32, i32, i32) {
    %c0_i32 = arith.constant 0 : i32
    %c0_i32_0 = arith.constant 0 : i32
    %c0_i32_1 = arith.constant 0 : i32
    %c0_i32_2 = arith.constant 0 : i32
    return %arg0, %c0_i32, %c0_i32_0, %c0_i32_1 : i32, i32, i32, i32
  }
  func.func @transform_1(%arg0: i32) -> (i32, i32) {
    %c0_i32 = arith.constant 0 : i32
    %c0_i32_0 = arith.constant 0 : i32
    %c0_i32_1 = arith.constant 0 : i32
    return %c0_i32, %c0_i32_0 : i32, i32
  }
  func.func @transform_2(%arg0: i32) -> (i32, i32) {
    %c0_i32 = arith.constant 0 : i32
    %c0_i32_0 = arith.constant 0 : i32
    %c0_i32_1 = arith.constant 0 : i32
    return %c0_i32, %c0_i32_0 : i32, i32
  }
  func.func @transform_3(%arg0: i32) -> (i32, i32) {
    %c0_i32 = arith.constant 0 : i32
    %c0_i32_0 = arith.constant 0 : i32
    %c0_i32_1 = arith.constant 0 : i32
    return %c0_i32, %c0_i32_0 : i32, i32
  }
  func.func @transform_4(%arg0: i32) -> (i32, i32) {
    %c0_i32 = arith.constant 0 : i32
    %c0_i32_0 = arith.constant 0 : i32
    %c0_i32_1 = arith.constant 0 : i32
    return %c0_i32, %c0_i32_0 : i32, i32
  }
  func.func @transform_5(%arg0: i32) -> (i32, i32) {
    %c0_i32 = arith.constant 0 : i32
    %c0_i32_0 = arith.constant 0 : i32
    %c0_i32_1 = arith.constant 0 : i32
    return %c0_i32, %c0_i32_0 : i32, i32
  }
  func.func @transform_6(%arg0: i32) -> (i32, i32) {
    %c0_i32 = arith.constant 0 : i32
    %c0_i32_0 = arith.constant 0 : i32
    %c0_i32_1 = arith.constant 0 : i32
    return %c0_i32, %c0_i32_0 : i32, i32
  }
  func.func @transform_7(%arg0: i32) -> (i32, i32, i32) {
    %c0_i32 = arith.constant 0 : i32
    %c0_i32_0 = arith.constant 0 : i32
    %c0_i32_1 = arith.constant 0 : i32
    return %arg0, %c0_i32, %c0_i32_0 : i32, i32, i32
  }
  func.func @transform_8(%arg0: i32) -> (i32, i32, i32) {
    %c0_i32 = arith.constant 0 : i32
    %c0_i32_0 = arith.constant 0 : i32
    %c0_i32_1 = arith.constant 0 : i32
    return %arg0, %c0_i32, %c0_i32_0 : i32, i32, i32
  }
  func.func @transform_9(%arg0: i32) -> (i32, i32, i32) {
    %c0_i32 = arith.constant 0 : i32
    %c0_i32_0 = arith.constant 0 : i32
    %c0_i32_1 = arith.constant 0 : i32
    return %arg0, %c0_i32, %c0_i32_0 : i32, i32, i32
  }
}

</mosaic_0001>

<bundles_post_ra>
// kernel: neg.1
= control target key start
LH: loop header
LB: loop body
LE: loop exit
PB: predicated region body
PF: predicated region fallthrough
CT: control target
= control target key end

     0   :  { %s72_s0 = inlined_call_operand.vmem [shape: f32[2,16,64], index: 0, kind: input, shape index: {}]   ;;  %s73_s1 = inlined_call_operand.vmem [shape: f32[2,16,64], index: 1, kind: output, shape index: {}]  }
   0x1   :  { %v2_v0 = vld [vmem:[%s72_s0] sm:$0xff]  ;;  %v32_v1 = vld [vmem:[%s72_s0 + $0x10] sm:$0xff]  ;;  %v34_v2 = vld [vmem:[%s72_s0 + $0x8] sm:$0xff] }
   0x2   :  { %v5_v3 = vxor.u32 2147483648, %v2_v0  ;;  %v12_v4 = vxor.u32 2147483648, %v32_v1  ;;  %v20_v5 = vxor.u32 2147483648, %v34_v2  ;;  %v36_v6 = vld [vmem:[%s72_s0 + $0x18] sm:$0xff] }
   0x3   :  { %v28_v7 = vxor.u32 2147483648, %v36_v6 }
   0x4   :  { %7 = vst [vmem:[%s73_s1] sm:$0xff] %v5_v3  ;;  %33 = vst [vmem:[%s73_s1 + $0x10] sm:$0xff] %v12_v4 }
   0x5   :  { %35 = vst [vmem:[%s73_s1 + $0x8] sm:$0xff] %v20_v5  ;;  %37 = vst [vmem:[%s73_s1 + $0x18] sm:$0xff] %v28_v7 }

// kernel: spectral_weight_forward.1
= control target key start
LH: loop header
LB: loop body
LE: loop exit
PB: predicated region body
PF: predicated region fallthrough
CT: control target
= control target key end

     0   :  { %v1448_v0 = vmov 0.0|0.0   ;;  %vm1449_vm0 = vmmov 0   ;;  %v1450_v3 = vmov 0.0   ;;  %vm36_vm1 = vcmask 130048   ;;  %s1896_s0 = inlined_call_operand.vmem [shape: f32[1,9,32,64], index: 0, kind: input, shape index: {}]   ;;  %s1897_s1 = inlined_call_operand.vmem [shape: f32[8,16], index: 1, kind: input, shape index: {}]   ;;  %s1898_s2 = inlined_call_operand.vmem [shape: f32[9,8], index: 2, kind: input, shape index: {}]   ;;  %s1899_s3 = inlined_call_operand.vmem [shape: f32[16,16], index: 3, kind: input, shape index: {}]   ;;  %s1900_s4 = inlined_call_operand.vmem [shape: f32[64,128], index: 4, kind: input, shape index: {}]   ;;  %s1901_s6 = inlined_call_operand.vmem [shape: f32[128,128], index: 6, kind: input, shape index: {}]   ;;  %s1902_s5 = inlined_call_operand.vmem [shape: f32[128,128], index: 5, kind: input, shape index: {}]   ;;  %s1903_s7 = inlined_call_operand.vmem [shape: f32[1,32,128], index: 7, kind: input, shape index: {}]   ;;  %s1904_s8 = inlined_call_operand.vmem [shape: f32[1,32,128], index: 8, kind: input, shape index: {}]   ;;  %s1905_s9 = inlined_call_operand.vmem [shape: f32[1,32,64], index: 9, kind: output, shape index: {}]  }
   0x1   :  { %1338 = vmatprep.subr.bf16.mxu0 %v1448_v0  ;;  %v1506_v1 = vld [vmem:[%s1896_s0 + $0x80] sm:$0xff]  ;;  %v1511_v2 = vld [vmem:[%s1896_s0 + $0x88] sm:$0xff]  ;;  %1206 = vmatprep.mubr.msk.f32.mxu0 %vm1449_vm0, %v1450_v3  ;;  %vm113_vm2 = vcmask 64512   ;;  %v197_v12 = vlaneseq  ;;  %vm371_vm3 = vcmask 523264  }
   0x2   :  { %v1339_v4 = vpack.c.bf16 %v1511_v2, %v1506_v1  ;;  %v1520_v5 = vld [vmem:[%s1897_s1] sm:$0xff]  ;;  %v112_v10 = vld [vmem:[%s1898_s2 + $0x8] sm:$0x1] }
   0x3   :  { %v111_v6 = vld [vmem:[%s1898_s2] sm:$0xff]  ;;  %v1540_v13 = vshrl.u32 %v197_v12, 7  ;;  %v196_v21 = vld [vmem:[%s1896_s0 + $0x8] sm:$0xff] }
   0x4   :  { %1340 = vmatpush3.bf16.msra.mxu0 %v1339_v4  ;;  %1230 = vmatprep.mubr.msk.f32.mxu1 %vm113_vm2, %v111_v6  ;;  %v1536_v11 = vld [vmem:[%s1899_s3] sm:$0xff]  ;;  %v1090_v23 = vld [vmem:[%s1896_s0 + $0x28] sm:$0xff] }
   0x5   :  { %v1543_v14 = vsub.s32 0, %v1540_v13  ;;  %v208_v15 = vsub.s32 1, %v1540_v13  ;;  %v219_v16 = vsub.s32 2, %v1540_v13  ;;  %v230_v17 = vsub.s32 3, %v1540_v13  ;;  %v195_v19 = vld [vmem:[%s1896_s0] sm:$0xff]  ;;  %v1092_v30 = vld [vmem:[%s1896_s0 + $0x48] sm:$0xff] }
   0x6   :  { %v1089_v22 = vld [vmem:[%s1896_s0 + $0x20] sm:$0xff]  ;;  %v238_v24 = vsub.s32 4, %v1540_v13  ;;  %v249_v31 = vsub.s32 5, %v1540_v13  ;;  %v1094_v37 = vld [vmem:[%s1896_s0 + $0x68] sm:$0xff]  ;;  %v260_v39 = vsub.s32 6, %v1540_v13  ;;  %v271_v45 = vsub.s32 7, %v1540_v13 }
   0x7   :  { %1207 = vmatmul.mubr.msk.f32.vlgmr.msra.gmra.mrb[0].mxu0 %vm36_vm1, %v1520_v5  ;;  %v1091_v29 = vld [vmem:[%s1896_s0 + $0x40] sm:$0xff]  ;;  %v1096_v52 = vld [vmem:[%s1896_s0 + $0xa8] sm:$0xff]  ;;  %v1123_v13 = vld [vmem:[%s1896_s0 + $0x118] sm:$0xff] }
   0x8   :  { %1211 = vmatprep.mubr.msk.f32.mxu0 %vm113_vm2, %v111_v6  ;;  %v1093_v36 = vld [vmem:[%s1896_s0 + $0x60] sm:$0xff]  ;;  %v1098_v59 = vld [vmem:[%s1896_s0 + $0xc8] sm:$0xff] }
   0x9   :  { %v1095_v50 = vld [vmem:[%s1896_s0 + $0xa0] sm:$0xff]  ;;  %v1100_v4 = vld [vmem:[%s1896_s0 + $0xe8] sm:$0xff] }
   0xa   :  { %v1097_v58 = vld [vmem:[%s1896_s0 + $0xc0] sm:$0xff]  ;;  %v1102_v12 = vld [vmem:[%s1896_s0 + $0x108] sm:$0xff] }
  0xda   :  { %v106_v7 = vpop.f32.mrb[0].mxu0 }
  0xdb   :  { %v110_v8 = vmax.f32 %v106_v7, 0.0  ;;  %v1208_v9 = vpop.f32.mrb[1].mxu0 }
  0xdd   :  { %1209 = vmatprep.subr.mxu0 %v110_v8 }
  0xde   :  { %1210 = vmatpush3.msra.mxu0 %v110_v8 }
  0xdf   :  { %1212 = vmatmul.mubr.msk.f32.vlgmr.msra.gmra.mrb[2].mxu0 %vm113_vm2, %v112_v10  ;;  %v1101_v10 = vld [vmem:[%s1896_s0 + $0x100] sm:$0xff] }
  0xe0   :  { %1218 = vmatprep.mubr.msk.f32.mxu0 %vm36_vm1, %v1536_v11 }
 0x1b2   :  { %v1213_v18 = vpop.f32.mrb[2].mxu0 }
 0x1b3   :  { %v186_v20 = vpop.f32.mrb[3].mxu0 }
 0x1b4   :  { %v200_v25 = vrot.slane %v186_v20, %v1543_v14  ;;  %v209_v26 = vrot.slane %v186_v20, %v208_v15  ;;  %v220_v27 = vrot.slane %v186_v20, %v219_v16  ;;  %v231_v28 = vrot.slane %v186_v20, %v230_v17 }
 0x1b5   :  { %v239_v38 = vrot.slane %v186_v20, %v238_v24  ;;  %v250_v44 = vrot.slane %v186_v20, %v249_v31  ;;  %v261_v56 = vrot.slane %v186_v20, %v260_v39  ;;  %v272_v63 = vrot.slane %v186_v20, %v271_v45 }
 0x1b6   :  { %v201_v32 = vmul.f32 %v200_v25, %v195_v19  ;;  %v202_v33 = vmul.f32 %v200_v25, %v196_v21  ;;  %v210_v34 = vmul.f32 %v1089_v22, %v209_v26  ;;  %v211_v35 = vmul.f32 %v1090_v23, %v209_v26 }
 0x1b7   :  { %v221_v42 = vmul.f32 %v1091_v29, %v220_v27  ;;  %v222_v43 = vmul.f32 %v1092_v30, %v220_v27  ;;  %v232_v48 = vmul.f32 %v1093_v36, %v231_v28  ;;  %v233_v49 = vmul.f32 %v1094_v37, %v231_v28  ;;  %v1621_v30 = vld [vmem:[%s1896_s0 + $0x90] sm:$0xff] }
 0x1b8   :  { %v212_v40 = vadd.f32 %v210_v34, %v201_v32  ;;  %v213_v41 = vadd.f32 %v211_v35, %v202_v33  ;;  %v240_v51 = vmul.f32 %v1506_v1, %v239_v38  ;;  %v241_v55 = vmul.f32 %v1511_v2, %v239_v38  ;;  %v1099_v2 = vld [vmem:[%s1896_s0 + $0xe0] sm:$0xff]  ;;  %v1626_v32 = vld [vmem:[%s1896_s0 + $0x98] sm:$0xff]  ;;  %v1631_v33 = vld [vmem:[%s1899_s3 + $0x8] sm:$0xff]  ;;  %s1451_s3 = smov 64  }
 0x1b9   :  { %v251_v57 = vmul.f32 %v1095_v50, %v250_v44  ;;  %v252_v62 = vmul.f32 %v1096_v52, %v250_v44  ;;  %v283_v1 = vrot.slane %v1213_v18, %v1543_v14  ;;  %v262_v8 = vmul.f32 %v1097_v58, %v261_v56  ;;  %v713_v44 = vld [vmem:[%s1900_s4 + $0x20] sm:$0xff]  ;;  %v716_v50 = vld [vmem:[%s1900_s4 + $0x38] sm:$0xff] }
 0x1ba   :  { %v223_v46 = vadd.f32 %v221_v42, %v212_v40  ;;  %v224_v47 = vadd.f32 %v222_v43, %v213_v41  ;;  %v263_v9 = vmul.f32 %v1098_v59, %v261_v56  ;;  %v273_v20 = vmul.f32 %v1099_v2, %v272_v63  ;;  %v452_v42 = vld [vmem:[%s1898_s2 + $0x8] sm:$0x1]  ;;  %v850_v59 = vld [vmem:[%s1901_s6 + $0x20] sm:$0xff] }
 0x1bb   :  { %v274_v21 = vmul.f32 %v1100_v4, %v272_v63  ;;  %v284_v22 = vmul.f32 %v1101_v10, %v283_v1  ;;  %v285_v23 = vmul.f32 %v1102_v12, %v283_v1  ;;  %v1346_v34 = vpack.c.bf16 %v1626_v32, %v1621_v30  ;;  %v853_v63 = vld [vmem:[%s1901_s6 + $0x38] sm:$0xff]  ;;  %v854_v2 = vld [vmem:[%s1901_s6 + $0x40] sm:$0xff]  ;;  %v855_v4 = vld [vmem:[%s1901_s6 + $0x48] sm:$0xff] }
 0x1bc   :  { %v234_v53 = vadd.f32 %v232_v48, %v223_v46  ;;  %v235_v54 = vadd.f32 %v233_v49, %v224_v47  ;;  %v714_v46 = vld [vmem:[%s1900_s4 + $0x28] sm:$0xff]  ;;  %v715_v49 = vld [vmem:[%s1900_s4 + $0x30] sm:$0xff]  ;;  %v535_v10 = vld [vmem:[%s1896_s0 + $0x18] sm:$0xff] }
 0x1bd   :  { %v1360_v48 = vpack.c.bf16 %v714_v46, %v713_v44  ;;  %v1110_v12 = vld [vmem:[%s1896_s0 + $0x30] sm:$0xff] }
 0x1be   :  { %v242_v60 = vadd.f32 %v240_v51, %v234_v53  ;;  %v243_v61 = vadd.f32 %v241_v55, %v235_v54  ;;  %v1364_v51 = vpack.c.bf16 %v716_v50, %v715_v49  ;;  %v846_v53 = vld [vmem:[%s1901_s6] sm:$0xff]  ;;  %v847_v54 = vld [vmem:[%s1901_s6 + $0x8] sm:$0xff]  ;;  %v848_v55 = vld [vmem:[%s1901_s6 + $0x10] sm:$0xff] }
 0x1bf   :  { %v1368_v56 = vpack.c.bf16 %v847_v54, %v846_v53 }
 0x1c0   :  { %v253_v6 = vadd.f32 %v251_v57, %v242_v60  ;;  %v254_v7 = vadd.f32 %v252_v62, %v243_v61  ;;  %v849_v57 = vld [vmem:[%s1901_s6 + $0x18] sm:$0xff]  ;;  %v851_v60 = vld [vmem:[%s1901_s6 + $0x28] sm:$0xff]  ;;  %v852_v62 = vld [vmem:[%s1901_s6 + $0x30] sm:$0xff] }
 0x1c1   :  { %v1372_v58 = vpack.c.bf16 %v849_v57, %v848_v55  ;;  %v1376_v61 = vpack.c.bf16 %v851_v60, %v850_v59  ;;  %v1380_v1 = vpack.c.bf16 %v853_v63, %v852_v62  ;;  %v1122_v57 = vld [vmem:[%s1896_s0 + $0x110] sm:$0xff] }
 0x1c2   :  { %v264_v18 = vadd.f32 %v262_v8, %v253_v6  ;;  %v265_v19 = vadd.f32 %v263_v9, %v254_v7  ;;  %v1384_v6 = vpack.c.bf16 %v855_v4, %v854_v2  ;;  %v534_v8 = vld [vmem:[%s1896_s0 + $0x10] sm:$0xff]  ;;  %v830_v4 = vld [vmem:[%s1902_s5] sm:$0xff] }
 0x1c4   :  { %v275_v25 = vadd.f32 %v273_v20, %v264_v18  ;;  %v276_v26 = vadd.f32 %v274_v21, %v265_v19  ;;  %v1111_v18 = vld [vmem:[%s1896_s0 + $0x38] sm:$0xff] }
 0x1c6   :  { %v286_v27 = vadd.f32 %v284_v22, %v275_v25  ;;  %v287_v28 = vadd.f32 %v285_v23, %v276_v26  ;;  %v1112_v23 = vld [vmem:[%s1896_s0 + $0x50] sm:$0xff]  ;;  %v1113_v25 = vld [vmem:[%s1896_s0 + $0x58] sm:$0xff] }
 0x1c8   :  { %v1341_v29 = vpack.c.bf16 %v287_v28, %v286_v27 }
 0x1ca   :  { %1342 = vmatprep.subr.bf16.mxu0 %v1341_v29 }
 0x1cb   :  { %1344 = vmatpush3.bf16.msra.mxu0 %v1341_v29 }
 0x1cc   :  { %1345 = vmatprep.subr.bf16.mxu0 %v1448_v0  ;;  %v709_v0 = vld [vmem:[%s1900_s4] sm:$0xff] }
 0x1ce   :  { %1219 = vmatmul.mubr.msk.f32.vlgmr.msra.gmra.mrb[4].mxu0 %vm36_vm1, %v1631_v33 }
 0x1cf   :  { %1347 = vmatpush3.bf16.msra.mxu0 %v1346_v34  ;;  %1225 = vmatprep.mubr.msk.f32.mxu0 %vm1449_vm0, %v1450_v3  ;;  %v710_v3 = vld [vmem:[%s1900_s4 + $0x8] sm:$0xff] }
 0x1d0   :  { %v1352_v41 = vpack.c.bf16 %v710_v3, %v709_v0 }
 0x1d2   :  { %1226 = vmatmul.mubr.msk.f32.vlgmr.msra.gmra.mrb[6].mxu0 %vm36_vm1, %v1520_v5  ;;  %v711_v5 = vld [vmem:[%s1900_s4 + $0x10] sm:$0xff] }
 0x1d3   :  { %1237 = vmatprep.mubr.msk.f32.mxu0 %vm36_vm1, %v1536_v11  ;;  %v712_v11 = vld [vmem:[%s1900_s4 + $0x18] sm:$0xff] }
 0x1d4   :  { %v1356_v43 = vpack.c.bf16 %v712_v11, %v711_v5 }
 0x2a1   :  { %v1220_v35 = vpop.f32.mrb[4].mxu0 }
 0x2a2   :  { %373 = vst.msk [vmem:[#allocation2 + $0x8] sm:$0xff] %vm371_vm3, %v1220_v35  ;;  %v362_v36 = vpop.f32.mrb[5].mxu0 }
 0x2a3   :  { %372 = vst.msk [vmem:[#allocation2] sm:$0xff] %vm371_vm3, %v362_v36 }
 0x2a5   :  { %v446_v37 = vpop.f32.mrb[6].mxu0 }
 0x2a6   :  { %v450_v38 = vmax.f32 %v446_v37, 0.0  ;;  %v1227_v40 = vpop.f32.mrb[7].mxu0 }
 0x2a7   :  { %v1116_v40 = vld [vmem:[%s1896_s0 + $0xb0] sm:$0xff] }
 0x2a8   :  { %1228 = vmatprep.subr.mxu1 %v450_v38 }
 0x2a9   :  { %1229 = vmatpush3.msra.mxu1 %v450_v38  ;;  %v706_v52 = vld [vmem:[#allocation2 + $0x8] sm:$0xff] }
 0x2aa   :  { %1231 = vmatmul.mubr.msk.f32.vlgmr.msra.gmra.mrb[0].mxu1 %vm113_vm2, %v452_v42  ;;  %1353 = vmatprep.subr.bf16.mxu1 %v1352_v41  ;;  %v705_v47 = vld [vmem:[#allocation2] sm:$0xff] }
 0x2ab   :  { %1355 = vmatpush3.bf16.msra.mxu1 %v1352_v41  ;;  %1256 = vmatprep.mubr.msk.f32.mxu1 %vm371_vm3, %v705_v47  ;;  %v1118_v47 = vld [vmem:[%s1896_s0 + $0xd0] sm:$0xff] }
 0x2ac   :  { %1357 = vmatprep.subr.bf16.mxu1 %v1356_v43 }
 0x2af   :  { %1359 = vmatpush3.bf16.msra.mxu1 %v1356_v43 }
 0x2b0   :  { %1361 = vmatprep.subr.bf16.mxu1 %v1360_v48 }
 0x2b3   :  { %1363 = vmatpush3.bf16.msra.mxu1 %v1360_v48 }
 0x2b4   :  { %1365 = vmatprep.subr.bf16.mxu1 %v1364_v51 }
 0x2b7   :  { %1367 = vmatpush3.bf16.msra.mxu1 %v1364_v51 }
 0x2b8   :  { %1369 = vmatprep.subr.bf16.mxu1 %v1368_v56 }
 0x2ba   :  { %1257 = vmatmul.mubr.msk.f32.vlgmr.msra.gmra.mrb[2].mxu1 %vm371_vm3, %v706_v52  ;;  %v1121_v52 = vld [vmem:[%s1896_s0 + $0xf8] sm:$0xff] }
 0x2bb   :  { %1371 = vmatpush3.bf16.msra.mxu1 %v1368_v56 }
 0x2bc   :  { %1373 = vmatprep.subr.bf16.mxu1 %v1372_v58 }
 0x2bf   :  { %1375 = vmatpush3.bf16.msra.mxu1 %v1372_v58 }
 0x2c0   :  { %1377 = vmatprep.subr.bf16.mxu1 %v1376_v61 }
 0x2c3   :  { %1379 = vmatpush3.bf16.msra.mxu1 %v1376_v61 }
 0x2c4   :  { %1381 = vmatprep.subr.bf16.mxu1 %v1380_v1 }
 0x2c7   :  { %1383 = vmatpush3.bf16.msra.mxu1 %v1380_v1 }
 0x2c8   :  { %1385 = vmatprep.subr.bf16.mxu1 %v1384_v6 }
 0x2cb   :  { %1387 = vmatpush3.bf16.msra.mxu1 %v1384_v6  ;;  %v831_v6 = vld [vmem:[%s1902_s5 + $0x8] sm:$0xff] }
 0x37d   :  { %v1232_v7 = vpop.f32.mrb[0].mxu1 }
 0x37e   :  { %v525_v9 = vpop.f32.mrb[1].mxu1 }
 0x37f   :  { %v539_v19 = vrot.slane %v525_v9, %v1543_v14  ;;  %v547_v20 = vrot.slane %v525_v9, %v208_v15  ;;  %v557_v21 = vrot.slane %v525_v9, %v219_v16  ;;  %v567_v22 = vrot.slane %v525_v9, %v230_v17  ;;  %v1114_v15 = vld [vmem:[%s1896_s0 + $0x70] sm:$0xff]  ;;  %v1115_v16 = vld [vmem:[%s1896_s0 + $0x78] sm:$0xff] }
 0x380   :  { %v575_v17 = vrot.slane %v525_v9, %v238_v24  ;;  %v585_v3 = vrot.slane %v525_v9, %v249_v31  ;;  %v1117_v24 = vld [vmem:[%s1896_s0 + $0xb8] sm:$0xff]  ;;  %v595_v31 = vrot.slane %v525_v9, %v260_v39  ;;  %v605_v51 = vrot.slane %v525_v9, %v271_v45  ;;  %v1120_v39 = vld [vmem:[%s1896_s0 + $0xf0] sm:$0xff] }
 0x381   :  { %v540_v26 = vmul.f32 %v539_v19, %v534_v8  ;;  %v541_v27 = vmul.f32 %v539_v19, %v535_v10  ;;  %v548_v28 = vmul.f32 %v1110_v12, %v547_v20  ;;  %v549_v29 = vmul.f32 %v1111_v18, %v547_v20  ;;  %v832_v12 = vld [vmem:[%s1902_s5 + $0x10] sm:$0xff]  ;;  %v833_v18 = vld [vmem:[%s1902_s5 + $0x18] sm:$0xff]  ;;  %v814_v19 = vld [vmem:[%s1903_s7] sm:$0xff] }
 0x382   :  { %v558_v36 = vmul.f32 %v1112_v23, %v557_v21  ;;  %v559_v0 = vmul.f32 %v1113_v25, %v557_v21  ;;  %v568_v11 = vmul.f32 %v1114_v15, %v567_v22  ;;  %v569_v38 = vmul.f32 %v1115_v16, %v567_v22  ;;  %v834_v22 = vld [vmem:[%s1902_s5 + $0x20] sm:$0xff]  ;;  %v835_v23 = vld [vmem:[%s1902_s5 + $0x28] sm:$0xff]  ;;  %v840_v16 = vld [vmem:[%s1902_s5 + $0x50] sm:$0xff] }
 0x383   :  { %v550_v34 = vadd.f32 %v548_v28, %v540_v26  ;;  %v551_v35 = vadd.f32 %v549_v29, %v541_v27  ;;  %v576_v41 = vmul.f32 %v1621_v30, %v575_v17  ;;  %v577_v44 = vmul.f32 %v1626_v32, %v575_v17  ;;  %v1119_v30 = vld [vmem:[%s1896_s0 + $0xd8] sm:$0xff]  ;;  %v836_v26 = vld [vmem:[%s1902_s5 + $0x30] sm:$0xff]  ;;  %v838_v29 = vld [vmem:[%s1902_s5 + $0x40] sm:$0xff] }
 0x384   :  { %v586_v46 = vmul.f32 %v1116_v40, %v585_v3  ;;  %v587_v50 = vmul.f32 %v1117_v24, %v585_v3  ;;  %v615_v32 = vrot.slane %v1232_v7, %v1543_v14  ;;  %v596_v55 = vmul.f32 %v1118_v47, %v595_v31  ;;  %v837_v27 = vld [vmem:[%s1902_s5 + $0x38] sm:$0xff]  ;;  %v844_v3 = vld [vmem:[%s1902_s5 + $0x70] sm:$0xff]  ;;  %v858_v24 = vld [vmem:[%s1901_s6 + $0x60] sm:$0xff] }
 0x385   :  { %v560_v37 = vadd.f32 %v558_v36, %v550_v34  ;;  %v561_v5 = vadd.f32 %v559_v0, %v551_v35  ;;  %v597_v56 = vmul.f32 %v1119_v30, %v595_v31  ;;  %v606_v59 = vmul.f32 %v1120_v39, %v605_v51  ;;  %v841_v17 = vld [vmem:[%s1902_s5 + $0x58] sm:$0xff]  ;;  %v842_v35 = vld [vmem:[%s1902_s5 + $0x60] sm:$0xff]  ;;  %v843_v36 = vld [vmem:[%s1902_s5 + $0x68] sm:$0xff] }
 0x386   :  { %v607_v60 = vmul.f32 %v1121_v52, %v605_v51  ;;  %v616_v62 = vmul.f32 %v1122_v57, %v615_v32  ;;  %v617_v63 = vmul.f32 %v1123_v13, %v615_v32  ;;  %v1400_v10 = vpack.c.bf16 %v831_v6, %v830_v4  ;;  %v856_v40 = vld [vmem:[%s1901_s6 + $0x50] sm:$0xff]  ;;  %v823_v51 = vld [vmem:[%s1904_s8 + $0x8] sm:$0xff]  ;;  %v817_v13 = vld [vmem:[%s1903_s7 + $0x18] sm:$0xff] }
 0x387   :  { %v570_v42 = vadd.f32 %v568_v11, %v560_v37  ;;  %v571_v43 = vadd.f32 %v569_v38, %v561_v5  ;;  %v1404_v20 = vpack.c.bf16 %v833_v18, %v832_v12  ;;  %v1408_v25 = vpack.c.bf16 %v835_v23, %v834_v22  ;;  %v845_v37 = vld [vmem:[%s1902_s5 + $0x78] sm:$0xff]  ;;  %v815_v11 = vld [vmem:[%s1903_s7 + $0x8] sm:$0xff]  ;;  %v860_v31 = vld [vmem:[%s1901_s6 + $0x70] sm:$0xff] }
 0x388   :  { %v1412_v28 = vpack.c.bf16 %v837_v27, %v836_v26  ;;  %v1420_v34 = vpack.c.bf16 %v841_v17, %v840_v16  ;;  %v1424_v0 = vpack.c.bf16 %v843_v36, %v842_v35  ;;  %v1428_v5 = vpack.c.bf16 %v845_v37, %v844_v3 }
 0x389   :  { %v578_v48 = vadd.f32 %v576_v41, %v570_v42  ;;  %v579_v49 = vadd.f32 %v577_v44, %v571_v43  ;;  %v857_v41 = vld [vmem:[%s1901_s6 + $0x58] sm:$0xff]  ;;  %v859_v43 = vld [vmem:[%s1901_s6 + $0x68] sm:$0xff] }
 0x38a   :  { %v1388_v42 = vpack.c.bf16 %v857_v41, %v856_v40  ;;  %v1392_v44 = vpack.c.bf16 %v859_v43, %v858_v24 }
 0x38b   :  { %v588_v53 = vadd.f32 %v586_v46, %v578_v48  ;;  %v589_v54 = vadd.f32 %v587_v50, %v579_v49  ;;  %v861_v46 = vld [vmem:[%s1901_s6 + $0x78] sm:$0xff]  ;;  %v822_v49 = vld [vmem:[%s1904_s8] sm:$0xff] }
 0x38c   :  { %1389 = vmatprep.subr.bf16.mxu1 %v1388_v42  ;;  %v1396_v47 = vpack.c.bf16 %v861_v46, %v860_v31 }
 0x38d   :  { %v1772_v14 = vpop.f32.mrb[2].mxu1  ;;  %v598_v45 = vadd.f32 %v596_v55, %v588_v53  ;;  %v599_v58 = vadd.f32 %v597_v56, %v589_v54  ;;  %1391 = vmatpush3.bf16.msra.mxu1 %v1388_v42  ;;  %v816_v55 = vld [vmem:[%s1903_s7 + $0x10] sm:$0xff] }
 0x38e   :  { %v1774_v61 = vpop.f32.mrb[3].mxu1  ;;  %v819_v38 = vmul.f32 %v1772_v14, %v815_v11  ;;  %1393 = vmatprep.subr.bf16.mxu1 %v1392_v44  ;;  %v827_v52 = vmul.f32 %v1772_v14, %v823_v51  ;;  %v824_v56 = vld [vmem:[%s1904_s8 + $0x10] sm:$0xff]  ;;  %v825_v14 = vld [vmem:[%s1904_s8 + $0x18] sm:$0xff] }
 0x38f   :  { %v608_v1 = vadd.f32 %v606_v59, %v598_v45  ;;  %v609_v2 = vadd.f32 %v607_v60, %v599_v58  ;;  %v818_v21 = vmul.f32 %v814_v19, %v1774_v61  ;;  %v826_v32 = vmul.f32 %v822_v49, %v1774_v61 }
 0x391   :  { %v618_v7 = vadd.f32 %v616_v62, %v608_v1  ;;  %v619_v8 = vadd.f32 %v617_v63, %v609_v2  ;;  %1395 = vmatpush3.bf16.msra.mxu1 %v1392_v44 }
 0x392   :  { %1397 = vmatprep.subr.bf16.mxu1 %v1396_v47 }
 0x393   :  { %v1348_v9 = vpack.c.bf16 %v619_v8, %v618_v7 }
 0x395   :  { %1349 = vmatprep.subr.bf16.mxu0 %v1348_v9  ;;  %1399 = vmatpush3.bf16.msra.mxu1 %v1396_v47 }
 0x396   :  { %1351 = vmatpush3.bf16.msra.mxu0 %v1348_v9 }
 0x397   :  { %1401 = vmatprep.subr.bf16.mxu0 %v1400_v10 }
 0x399   :  { %1238 = vmatmul.mubr.msk.f32.vlgmr.msra.gmra.mrb[8].mxu0 %vm36_vm1, %v1631_v33  ;;  %v839_v33 = vld [vmem:[%s1902_s5 + $0x48] sm:$0xff] }
 0x39a   :  { %1403 = vmatpush3.bf16.msra.mxu0 %v1400_v10  ;;  %1332 = vmatprep.mubr.f32.mxu0 %v818_v21  ;;  %v1416_v15 = vpack.c.bf16 %v839_v33, %v838_v29 }
 0x39b   :  { %1405 = vmatprep.subr.bf16.mxu0 %v1404_v20 }
 0x39e   :  { %1407 = vmatpush3.bf16.msra.mxu0 %v1404_v20 }
 0x39f   :  { %1409 = vmatprep.subr.bf16.mxu0 %v1408_v25 }
 0x3a2   :  { %1411 = vmatpush3.bf16.msra.mxu0 %v1408_v25 }
 0x3a3   :  { %1413 = vmatprep.subr.bf16.mxu0 %v1412_v28 }
 0x3a6   :  { %1415 = vmatpush3.bf16.msra.mxu0 %v1412_v28 }
 0x3a7   :  { %1417 = vmatprep.subr.bf16.mxu0 %v1416_v15 }
 0x3aa   :  { %1419 = vmatpush3.bf16.msra.mxu0 %v1416_v15 }
 0x3ab   :  { %1421 = vmatprep.subr.bf16.mxu0 %v1420_v34 }
 0x3ae   :  { %1423 = vmatpush3.bf16.msra.mxu0 %v1420_v34 }
 0x3af   :  { %1425 = vmatprep.subr.bf16.mxu0 %v1424_v0 }
 0x3b2   :  { %1427 = vmatpush3.bf16.msra.mxu0 %v1424_v0 }
 0x3b3   :  { %1429 = vmatprep.subr.bf16.mxu0 %v1428_v5 }
 0x3b6   :  { %1431 = vmatpush3.bf16.msra.mxu0 %v1428_v5 }
 0x3b9   :  { %1333 = vmatmul.mubr.f32.vlgmr.msra.gmra.mrb[10].mxu0 %v819_v38 }
 0x46c   :  { %v1239_v30 = vpop.f32.mrb[8].mxu0 }
 0x46d   :  { %704 = vst.msk [vmem:[#allocation2 + $0x18] sm:$0xff] %vm371_vm3, %v1239_v30  ;;  %v694_v48 = vpop.f32.mrb[9].mxu0 }
 0x46e   :  { %703 = vst.msk [vmem:[#allocation2 + $0x10] sm:$0xff] %vm371_vm3, %v694_v48 }
 0x474   :  { %v708_v39 = vld [vmem:[#allocation2 + $0x18] sm:$0xff] }
 0x475   :  { %v707_v50 = vld [vmem:[#allocation2 + $0x10] sm:$0xff] }
 0x476   :  { %1259 = vmatprep.mubr.msk.f32.mxu1 %vm371_vm3, %v707_v50 }
 0x477   :  { %1260 = vmatmul.mubr.msk.f32.gmra.mrb[4].mxu1 %vm371_vm3, %v708_v39 }
 0x478   :  { %1294 = vmatprep.mubr.f32.mxu1 %v826_v32 }
 0x47b   :  { %1295 = vmatmul.mubr.f32.vlgmr.msra.gmra.mrb[6].mxu1 %v827_v52 }
 0x48c   :  { %v1334_v53 = vpop.f32.mrb[10].mxu0 }
 0x48d   :  { %v1013_v54 = vpop.f32.mrb[11].mxu0 }
 0x54a   :  { %v1261_v57 = vpop.f32.mrb[4].mxu1 }
 0x54b   :  { %v805_v45 = vpop.f32.mrb[5].mxu1  ;;  %v821_v60 = vmul.f32 %v1261_v57, %v817_v13  ;;  %v829_v61 = vmul.f32 %v1261_v57, %v825_v14 }
 0x54c   :  { %v820_v58 = vmul.f32 %v816_v55, %v805_v45  ;;  %v828_v59 = vmul.f32 %v824_v56, %v805_v45 }
 0x54e   :  { %v1296_v62 = vpop.f32.mrb[6].mxu1  ;;  %1297 = vmatprep.mubr.f32.mxu1 %v828_v59  ;;  %1335 = vmatprep.mubr.f32.mxu0 %v820_v58 }
 0x54f   :  { %v1019_v63 = vadd.f32 %v1334_v53, %v1296_v62  ;;  %v928_v1 = vpop.f32.mrb[7].mxu1  ;;  %1298 = vmatmul.mubr.f32.gmra.mrb[8].mxu1 %v829_v61  ;;  %1336 = vmatmul.mubr.f32.gmra.mrb[12].mxu0 %v821_v60 }
 0x550   :  { %v1014_v2 = vadd.f32 %v1013_v54, %v928_v1 }
 0x551   :  { %v1033_v6 = vmul.f32 %v1019_v63, %v1019_v63 }
 0x552   :  { %v1032_v4 = vmul.f32 %v1014_v2, %v1014_v2 }
 0x554   :  { %1036 = vrot.lane.b32.xlu0 %v1032_v4, %s1451_s3 }
 0x558   :  { %1038 = vrot.lane.b32.xlu0 %v1033_v6, %s1451_s3 }
 0x5c6   :  { %v1037_v7 = vpop.permute.xlu0 %1036 }
 0x5c7   :  { %v1044_v8 = vadd.f32 %v1037_v7, %v1032_v4 }
 0x5c9   :  { %1440 = vrsqrt.f32 %v1044_v8  ;;  %vm1050_vm4 = vcmp.eq.f32.partialorder %v1044_v8, inf  ;;  %v1053_v19 = vand.u32 2147483648, %v1044_v8  ;;  %vm1052_vm5 = vcmp.eq.f32.partialorder %v1044_v8, 0.0 }
 0x5ca   :  { %v1039_v9 = vpop.permute.xlu0 %1038 }
 0x5cb   :  { %v1045_v10 = vadd.f32 %v1039_v9, %v1033_v6 }
 0x5cd   :  { %1442 = vrsqrt.f32 %v1045_v10  ;;  %vm1057_vm6 = vcmp.eq.f32.partialorder %v1045_v10, inf  ;;  %v1060_v25 = vand.u32 2147483648, %v1045_v10  ;;  %vm1059_vm7 = vcmp.eq.f32.partialorder %v1045_v10, 0.0 }
 0x5d3   :  { %v1441_v12 = vpop.eup %1440 }
 0x5d4   :  { %v1049_v18 = vmul.f32 %v1441_v12, %v1044_v8 }
 0x5d6   :  { %v1051_v20 = vsel %vm1050_vm4, %v1044_v8, %v1049_v18 }
 0x5d7   :  { %v1443_v21 = vpop.eup %1442  ;;  %v1054_v22 = vsel %vm1052_vm5, %v1053_v19, %v1051_v20 }
 0x5d8   :  { %1076 = vst.msk [vmem:[%s1905_s9] sm:$0xff] %vm371_vm3, %v1054_v22  ;;  %v1056_v23 = vmul.f32 %v1443_v21, %v1045_v10 }
 0x5da   :  { %v1058_v26 = vsel %vm1057_vm6, %v1045_v10, %v1056_v23 }
 0x5db   :  { %v1061_v27 = vsel %vm1059_vm7, %v1060_v25, %v1058_v26 }
 0x5dc   :  { %1077 = vst.msk [vmem:[%s1905_s9 + $0x8] sm:$0xff] %vm371_vm3, %v1061_v27 }
 0x622   :  { %v1299_v28 = vpop.f32.mrb[8].mxu1  ;;  %v1337_v29 = vpop.f32.mrb[12].mxu0 }
 0x623   :  { %v1029_v33 = vadd.f32 %v1337_v29, %v1299_v28  ;;  %v938_v15 = vpop.f32.mrb[9].mxu1  ;;  %v1023_v16 = vpop.f32.mrb[13].mxu0 }
 0x624   :  { %v1024_v17 = vadd.f32 %v1023_v16, %v938_v15 }
 0x625   :  { %v1035_v35 = vmul.f32 %v1029_v33, %v1029_v33 }
 0x626   :  { %v1034_v34 = vmul.f32 %v1024_v17, %v1024_v17 }
 0x628   :  { %1040 = vrot.lane.b32.xlu1 %v1034_v34, %s1451_s3 }
 0x62c   :  { %1042 = vrot.lane.b32.xlu1 %v1035_v35, %s1451_s3 }
 0x69a   :  { %v1041_v36 = vpop.permute.xlu1 %1040 }
 0x69b   :  { %v1046_v0 = vadd.f32 %v1041_v36, %v1034_v34 }
 0x69d   :  { %1444 = vrsqrt.f32 %v1046_v0  ;;  %vm1064_vm8 = vcmp.eq.f32.partialorder %v1046_v0, inf  ;;  %v1067_v38 = vand.u32 2147483648, %v1046_v0  ;;  %vm1066_vm9 = vcmp.eq.f32.partialorder %v1046_v0, 0.0 }
 0x69e   :  { %v1043_v3 = vpop.permute.xlu1 %1042 }
 0x69f   :  { %v1047_v37 = vadd.f32 %v1043_v3, %v1035_v35 }
 0x6a1   :  { %1446 = vrsqrt.f32 %v1047_v37  ;;  %vm1071_vm10 = vcmp.eq.f32.partialorder %v1047_v37, inf  ;;  %v1074_v43 = vand.u32 2147483648, %v1047_v37  ;;  %vm1073_vm11 = vcmp.eq.f32.partialorder %v1047_v37, 0.0 }
 0x6a7   :  { %v1445_v5 = vpop.eup %1444 }
 0x6a8   :  { %v1063_v11 = vmul.f32 %v1445_v5, %v1046_v0 }
 0x6aa   :  { %v1065_v40 = vsel %vm1064_vm8, %v1046_v0, %v1063_v11 }
 0x6ab   :  { %v1447_v41 = vpop.eup %1446  ;;  %v1068_v24 = vsel %vm1066_vm9, %v1067_v38, %v1065_v40 }
 0x6ac   :  { %1078 = vst.msk [vmem:[%s1905_s9 + $0x10] sm:$0xff] %vm371_vm3, %v1068_v24  ;;  %v1070_v42 = vmul.f32 %v1447_v41, %v1047_v37 }
 0x6ae   :  { %v1072_v44 = vsel %vm1071_vm10, %v1047_v37, %v1070_v42 }
 0x6af   :  { %v1075_v31 = vsel %vm1073_vm11, %v1074_v43, %v1072_v44 }
 0x6b0   :  { %1079 = vst.msk [vmem:[%s1905_s9 + $0x18] sm:$0xff] %vm371_vm3, %v1075_v31 }

</bundles_post_ra>
